<compile_context>
chip_gen: v7x
topology: tpu7x:2x2x1
jax: 0.10.0
libtpu: 0.0.40
codegen_flags: <defaults>
</compile_context>

<pallas_src>
import jax
import jax.numpy as jnp
from jax import lax
from jax.experimental import pallas as pl
from jax.experimental.pallas import tpu as pltpu

LANE = 128


def mlp_kernel(x_ref, w1_ref, b1_ref, w2_ref, b2_ref, o_ref):
    # Layer 1: h = x @ W1^T + b1 ; W1 is (hidden, in), contract both last dims.
    h = lax.dot_general(
        x_ref[...], w1_ref[...],
        dimension_numbers=(((1,), (1,)), ((), ())),
        preferred_element_type=jnp.float32,
    )
    # Bias + ReLU in f32 on the VPU (v5e-safe; accumulation already f32).
    h = jnp.maximum(h + b1_ref[...], 0.0)

    # Layer 2: out = h @ W2^T + b2 ; W2 is (action_pad, hidden).
    out = lax.dot_general(
        h.astype(w2_ref.dtype), w2_ref[...],
        dimension_numbers=(((1,), (1,)), ((), ())),
        preferred_element_type=jnp.float32,
    )
    o_ref[...] = (out + b2_ref[...]).astype(o_ref.dtype)


def mlp_forward(x, w1, b1, w2, b2, *, block_b=512, compute_dtype=jnp.bfloat16):
    """Forward pass of the PyTorch MLP.

    x:  (B, input_size)
    w1: (hidden, input_size), b1: (hidden,)      -- torch.nn.Linear layout
    w2: (action, hidden),     b2: (action,)
    Returns (B, action) in x.dtype.
    """
    B, in_features = x.shape
    hidden = w1.shape[0]
    action = w2.shape[0]

    # Pad the output feature dim to a multiple of 128 lanes so every store is
    # an unmasked, lane-dense vst. Slice the padding off outside the kernel.
    action_pad = ((action + LANE - 1) // LANE) * LANE
    if action_pad != action:
        w2p = jnp.pad(w2, ((0, action_pad - action), (0, 0)))
        b2p = jnp.pad(b2, (0, action_pad - action))
    else:
        w2p, b2p = w2, b2

    # Biases stay f32 (VPU path); matmul operands go to the MXU in bf16.
    # NOTE: in production, store the params in compute_dtype once instead of
    # converting per call.
    b1_2d = b1.reshape(1, hidden).astype(jnp.float32)
    b2_2d = b2p.reshape(1, action_pad).astype(jnp.float32)
    x_c = x.astype(compute_dtype)
    w1_c = w1.astype(compute_dtype)    # (hidden, in)      -- no transpose
    w2_c = w2p.astype(compute_dtype)   # (action_pad, hidden)

    # Batch tile: as large as requested, sublane-aligned, clamped to B.
    tm = min(block_b, B)
    if tm < B:
        tm = max(8, (tm // 8) * 8)
    grid = (pl.cdiv(B, tm),)

    out_pad = pl.pallas_call(
        mlp_kernel,
        out_shape=jax.ShapeDtypeStruct((B, action_pad), x.dtype),
        grid_spec=pltpu.PrefetchScalarGridSpec(
            num_scalar_prefetch=0,
            grid=grid,
            in_specs=[
                # x: tiled over batch rows.
                pl.BlockSpec((tm, in_features), lambda i: (i, 0)),
                # Weights / biases: same block every step -> resident in VMEM.
                pl.BlockSpec((hidden, in_features), lambda i: (0, 0)),
                pl.BlockSpec((1, hidden), lambda i: (0, 0)),
                pl.BlockSpec((action_pad, hidden), lambda i: (0, 0)),
                pl.BlockSpec((1, action_pad), lambda i: (0, 0)),
            ],
            out_specs=pl.BlockSpec((tm, action_pad), lambda i: (i, 0)),
        ),
        compiler_params=pltpu.CompilerParams(
            # Batch rows are independent -> shard the grid across TCs (v7x);
            # harmless on single-TC v5e/v6e.
            dimension_semantics=("parallel",),
        ),
    )(x_c, w1_c, b1_2d, w2_c, b2_2d)

    return out_pad[:, :action]


def init_linear_params(key, in_features, out_features, dtype=jnp.float32):
    """Deterministic init mirroring torch.nn.Linear: U(-1/sqrt(in), 1/sqrt(in))."""
    kw, kb = jax.random.split(key)
    bound = 1.0 / jnp.sqrt(jnp.asarray(in_features, dtype))
    w = jax.random.uniform(kw, (out_features, in_features), dtype,
                           minval=-bound, maxval=bound)
    b = jax.random.uniform(kb, (out_features,), dtype,
                           minval=-bound, maxval=bound)
    return w, b


if __name__ == "__main__":
    # Small shapes consistent with the module's forward: x is (batch, input_size).
    batch = 64
    input_size = 32
    hidden_size = 256      # module default
    action_size = 8

    key = jax.random.PRNGKey(0)
    kx, k1, k2 = jax.random.split(key, 3)

    x = jax.random.normal(kx, (batch, input_size), jnp.float32)
    w1, b1 = init_linear_params(k1, input_size, hidden_size)
    w2, b2 = init_linear_params(k2, hidden_size, action_size)

    # block_b=32 so the example actually exercises the batch grid (grid=(2,)).
    out = mlp_forward(x, w1, b1, w2, b2, block_b=32)
    out = jax.block_until_ready(out)

    # Reference in plain f32 JAX (same math as the PyTorch forward).
    # bf16 MXU operands -> loosen tolerance vs. the pure-f32 reference.
    ref = jnp.maximum(x @ w1.T + b1, 0.0) @ w2.T + b2
    assert out.shape == (batch, action_size)
    assert jnp.allclose(out, ref, atol=3e-2, rtol=3e-2), (
        float(jnp.max(jnp.abs(out - ref))))

    print("KERNEL_OK")
</pallas_src>

<mosaic_0001>
module attributes {stable_mosaic.version = 11 : i64} {
  func.func @mlp_kernel(%arg0: i32, %arg1: memref<32x32xbf16, #tpu.memory_space<vmem>>, %arg2: memref<256x32xbf16, #tpu.memory_space<vmem>>, %arg3: memref<1x256xf32, #tpu.memory_space<vmem>>, %arg4: memref<128x256xbf16, #tpu.memory_space<vmem>>, %arg5: memref<1x128xf32, #tpu.memory_space<vmem>>, %arg6: memref<32x128xf32, #tpu.memory_space<vmem>>) attributes {dimension_semantics = [#tpu.dimension_semantics<parallel>], iteration_bounds = array<i64: 2>, scalar_prefetch = 0 : i64, scratch_operands = 0 : i64, tpu.core_type = #tpu.core_type<tc>, window_params = [{transform_indices = @transform_0, window_bounds = array<i64: 32, 32>}, {pipeline_mode = #tpu.pipeline_mode<synchronous>, transform_indices = @transform_1, window_bounds = array<i64: 256, 32>}, {pipeline_mode = #tpu.pipeline_mode<synchronous>, transform_indices = @transform_2, window_bounds = array<i64: 1, 256>}, {pipeline_mode = #tpu.pipeline_mode<synchronous>, transform_indices = @transform_3, window_bounds = array<i64: 128, 256>}, {pipeline_mode = #tpu.pipeline_mode<synchronous>, transform_indices = @transform_4, window_bounds = array<i64: 1, 128>}, {transform_indices = @transform_5, window_bounds = array<i64: 32, 128>}]} {
    %c0 = arith.constant 0 : index
    %c0_0 = arith.constant 0 : index
    %0 = vector.load %arg1[%c0, %c0_0] : memref<32x32xbf16, #tpu.memory_space<vmem>>, vector<32x32xbf16>
    %c0_1 = arith.constant 0 : index
    %c0_2 = arith.constant 0 : index
    %1 = vector.load %arg2[%c0_1, %c0_2] : memref<256x32xbf16, #tpu.memory_space<vmem>>, vector<256x32xbf16>
    %cst = arith.constant dense<0.000000e+00> : vector<32x256xf32>
    %2 = tpu.matmul %0, %1, %cst {dimension_numbers = #tpu.dot_dimension_numbers<[1], [1], [0], [0], [0, 0, 1, 0], [], []>} : vector<32x32xbf16>, vector<256x32xbf16>, vector<32x256xf32> -> vector<32x256xf32>
    %c0_3 = arith.constant 0 : index
    %c0_4 = arith.constant 0 : index
    %3 = vector.load %arg3[%c0_3, %c0_4] : memref<1x256xf32, #tpu.memory_space<vmem>>, vector<1x256xf32>
    %4 = vector.broadcast %3 : vector<1x256xf32> to vector<32x256xf32>
    %5 = arith.addf %2, %4 : vector<32x256xf32>
    %cst_5 = arith.constant 0.000000e+00 : f32
    %6 = vector.broadcast %cst_5 : f32 to vector<32x256xf32>
    %7 = arith.maximumf %5, %6 : vector<32x256xf32>
    %8 = arith.truncf %7 : vector<32x256xf32> to vector<32x256xbf16>
    %c0_6 = arith.constant 0 : index
    %c0_7 = arith.constant 0 : index
    %9 = vector.load %arg4[%c0_6, %c0_7] : memref<128x256xbf16, #tpu.memory_space<vmem>>, vector<128x256xbf16>
    %cst_8 = arith.constant dense<0.000000e+00> : vector<32x128xf32>
    %10 = tpu.matmul %8, %9, %cst_8 {dimension_numbers = #tpu.dot_dimension_numbers<[1], [1], [0], [0], [0, 0, 1, 0], [], []>} : vector<32x256xbf16>, vector<128x256xbf16>, vector<32x128xf32> -> vector<32x128xf32>
    %c0_9 = arith.constant 0 : index
    %c0_10 = arith.constant 0 : index
    %11 = vector.load %arg5[%c0_9, %c0_10] : memref<1x128xf32, #tpu.memory_space<vmem>>, vector<1x128xf32>
    %12 = vector.broadcast %11 : vector<1x128xf32> to vector<32x128xf32>
    %13 = arith.addf %10, %12 : vector<32x128xf32>
    %c0_11 = arith.constant 0 : index
    %c0_12 = arith.constant 0 : index
    %14 = vector.load %arg6[%c0_11, %c0_12] : memref<32x128xf32, #tpu.memory_space<vmem>>, vector<32x128xf32>
    tpu.vector_store %arg6[%c0_11, %c0_12], %13 {strides = array<i32>} : memref<32x128xf32, #tpu.memory_space<vmem>>, vector<32x128xf32>,
    return
  }
  func.func @transform_0(%arg0: i32) -> (i32, i32) {
    %c0_i32 = arith.constant 0 : i32
    %c0_i32_0 = arith.constant 0 : i32
    return %arg0, %c0_i32 : i32, i32
  }
  func.func @transform_1(%arg0: i32) -> (i32, i32) {
    %c0_i32 = arith.constant 0 : i32
    %c0_i32_0 = arith.constant 0 : i32
    %c0_i32_1 = arith.constant 0 : i32
    return %c0_i32, %c0_i32_0 : i32, i32
  }
  func.func @transform_2(%arg0: i32) -> (i32, i32) {
    %c0_i32 = arith.constant 0 : i32
    %c0_i32_0 = arith.constant 0 : i32
    %c0_i32_1 = arith.constant 0 : i32
    return %c0_i32, %c0_i32_0 : i32, i32
  }
  func.func @transform_3(%arg0: i32) -> (i32, i32) {
    %c0_i32 = arith.constant 0 : i32
    %c0_i32_0 = arith.constant 0 : i32
    %c0_i32_1 = arith.constant 0 : i32
    return %c0_i32, %c0_i32_0 : i32, i32
  }
  func.func @transform_4(%arg0: i32) -> (i32, i32) {
    %c0_i32 = arith.constant 0 : i32
    %c0_i32_0 = arith.constant 0 : i32
    %c0_i32_1 = arith.constant 0 : i32
    return %c0_i32, %c0_i32_0 : i32, i32
  }
  func.func @transform_5(%arg0: i32) -> (i32, i32) {
    %c0_i32 = arith.constant 0 : i32
    %c0_i32_0 = arith.constant 0 : i32
    return %arg0, %c0_i32 : i32, i32
  }
}

</mosaic_0001>

<bundles_post_ra>
// kernel: tpu_custom_call.1
= control target key start
LH: loop header
LB: loop body
LE: loop exit
PB: predicated region body
PF: predicated region fallthrough
CT: control target
= control target key end

     0   :  { %10 = vsyncpa [#allocation3], 0  ;;  %s1203_s0 = inlined_call_operand.vmem [shape: bf16[64,32], index: 0, kind: input, shape index: {}]   ;;  %s1204_s1 = inlined_call_operand.vmem [shape: bf16[256,32], index: 1, kind: input, shape index: {}]   ;;  %s1205_s2 = inlined_call_operand.vmem [shape: f32[1,256], index: 2, kind: input, shape index: {}]   ;;  %s1206_s3 = inlined_call_operand.vmem [shape: bf16[128,256], index: 3, kind: input, shape index: {}]   ;;  %s1207_s4 = inlined_call_operand.vmem [shape: f32[1,128], index: 4, kind: input, shape index: {}]   ;;  %s1208_s5 = inlined_call_operand.hbm [shape: f32[64,128], index: 5, kind: output, shape index: {}]  }
   0x1   :  { %12 = vsyncpa [#allocation3 + $0x1], 0  ;;  %s975_s18 = smov 0   ;;  %s977_s19 = smov 0  }
   0x2   :  { %s979_s20 = smov 0   ;;  %s981_s21 = smov 0  }
   0x3 LB: > { %s996_s22 = sadd.s32 4294967295, %s940_s21   ;;  %s717_s23 = sadd.s32 4294967294, %s940_s21   ;;  %s940_s21 = sphi %s981_s21, %s1214_s21   ;;  %s936_s20 = sphi %s979_s20, %s1213_s20   ;;  %s932_s19 = sphi %s977_s19, %s1212_s19   ;;  %s928_s18 = sphi %s975_s18, %s1211_s18  }
   0x4   : > { %s1000_s24 = sadd.s32 1, %s940_s21   ;;  %s135_s25 = sadd.s32 1, %s936_s20 }
   0x5   : > { %s132_s26 = ssub.s32 %s940_s21, %s1000_s24  ;;  %p145_p0 = scmp.ne.s32.totalorder %s936_s20, %s932_s19 }
   0x6   : > { %p133_p1 = scmp.eq.s32.totalorder %s132_s26, 0  ;;  %p146_p2 = scmp.eq.s32.totalorder %s996_s22, 1 }
   0x7   : > { %p151_p3 = scmp.ne.s32.totalorder %s932_s19, %s928_s18  ;;  %p152_p4 = scmp.eq.s32.totalorder %s717_s23, 1 }
   0x8   : > { %s1011_s27 = scalar_select %p133_p1, %s936_s20, %s135_s25  }
   0x9   : > { %p1013_p5 = por %p146_p2, %p145_p0  ;;  %p1017_p6 = por %p152_p4, %p151_p3 }
   0xa   : > { %p720_p7 = scmp.ge.s32.totalorder %s940_s21, 1  ;;  %p191_p8 = scmp.lt.s32.totalorder %s940_s21, 3 }
   0xc   : > { %p192_p9 = pnand %p720_p7, %p191_p8 }
   0xd   : > { %v836_v0 = vld [vmem:[%s1204_s1 + $0x40] sm:$0xff] (!%p192_p9)   ;;  %vm365_vm0 = vcmask (!%p192_p9), 261120   ;;  %s722_s9 = sshll.u32 (!%p192_p9), %s996_s22, 2  ;;  %v838_v2 = vld [vmem:[%s1204_s1 + $0x48] sm:$0xff] (!%p192_p9)   ;;  %v840_v6 = vld [vmem:[%s1204_s1 + $0x50] sm:$0xff] (!%p192_p9)   ;;  %v265_v42 = vlaneseq (!%p192_p9)  ;;  %s216_s14 = sand.u32 (!%p192_p9), 1, %s932_s19  }
   0xe   : > { %195 = sbr.rel (%p192_p9) target bundleno = 540 (0x21c), region = 40  ;;  %v837_v1 = vld [vmem:[%s1204_s1] sm:$0xff] (!%p192_p9)   ;;  %787 = vmatprep.subr.msk.bf16.mxu0 (!%p192_p9), %vm365_vm0, %v836_v0  ;;  %p220_p10 = scmp.lt.s32.totalorder (!%p192_p9), %s722_s9, 7  ;;  %v839_v4 = vld [vmem:[%s1204_s1 + $0x8] sm:$0xff] (!%p192_p9)   ;;  %v841_v7 = vld [vmem:[%s1204_s1 + $0x10] sm:$0xff] (!%p192_p9)  }
   0xf   : > { %v373_v3 = vsel (!%p192_p9), %vm365_vm0, %v837_v1, 0  ;;  %v376_v5 = vsel (!%p192_p9), %vm365_vm0, %v839_v4, 0  ;;  %v379_v9 = vsel (!%p192_p9), %vm365_vm0, %v841_v7, 0  ;;  %v842_v10 = vld [vmem:[%s1204_s1 + $0x58] sm:$0xff] (!%p192_p9)   ;;  %v854_v11 = vld [vmem:[%s1206_s3 + $0x4] ss:$8 sps:$4 sm:$0xff] (!%p192_p9)  }
  0x10   : > { %768 = vmatpush3.bf16.xpose.msra.mxu0 (!%p192_p9), %v373_v3  ;;  %v856_v12 = vld [vmem:[%s1206_s3] ss:$8 sps:$4 sm:$0xff] (!%p192_p9)   ;;  %588 = vmatprep.subr.bf16.mxu1 (!%p192_p9), %v854_v11  ;;  %v857_v13 = vld [vmem:[%s1206_s3 + $0x14] ss:$8 sps:$4 sm:$0xff] (!%p192_p9)   ;;  %v859_v17 = vld [vmem:[%s1206_s3 + $0x10] ss:$8 sps:$4 sm:$0xff] (!%p192_p9)  }
  0x11   : > { %788 = vmatprep.subr.msk.bf16.mxu0 (!%p192_p9), %vm365_vm0, %v838_v2  ;;  %v843_v14 = vld [vmem:[%s1204_s1 + $0x18] sm:$0xff] (!%p192_p9)   ;;  %589 = vmatpush1.bf16.xpose.msra.mxu1 (!%p192_p9), %v856_v12  ;;  %v844_v16 = vld [vmem:[%s1204_s1 + $0x60] sm:$0xff] (!%p192_p9)   ;;  %v846_v21 = vld [vmem:[%s1204_s1 + $0x68] sm:$0xff] (!%p192_p9)   ;;  %v266_v43 = vshrl.u32 (!%p192_p9), %v265_v42, 7  ;;  %s721_s15 = sshll.u32 (!%p192_p9), %s216_s14, 5  ;;  %s766_s26 = sshll.u32 (!%p192_p9), %s996_s22, 9 }
  0x12   : > { %590 = vmatprep.subr.bf16.mxu1 (!%p192_p9), %v857_v13  ;;  %v382_v15 = vsel (!%p192_p9), %vm365_vm0, %v843_v14, 0  ;;  %v860_v18 = vld [vmem:[%s1206_s3 + $0x24] ss:$8 sps:$4 sm:$0xff] (!%p192_p9)   ;;  %v862_v22 = vld [vmem:[%s1206_s3 + $0x20] ss:$8 sps:$4 sm:$0xff] (!%p192_p9)   ;;  %v848_v26 = vld [vmem:[%s1204_s1 + $0x70] sm:$0xff] (!%p192_p9)   ;;  %s1160_s8 = scalar_lea.hbm (!%p192_p9), %s1208_s5, %s766_s26 }
  0x13   : > { %v845_v19 = vld [vmem:[%s1204_s1 + $0x20] sm:$0xff] (!%p192_p9)   ;;  %v863_v23 = vld [vmem:[%s1206_s3 + $0x34] ss:$8 sps:$4 sm:$0xff] (!%p192_p9)   ;;  %v847_v24 = vld [vmem:[%s1204_s1 + $0x28] sm:$0xff] (!%p192_p9)   ;;  %v267_v44 = vsub.s32 (!%p192_p9), 0, %v266_v43  ;;  %v271_v46 = vsub.s32 (!%p192_p9), 1, %v266_v43 }
  0x14   : > { %v385_v20 = vsel (!%p192_p9), %vm365_vm0, %v845_v19, 0  ;;  %v388_v25 = vsel (!%p192_p9), %vm365_vm0, %v847_v24, 0  ;;  %v865_v27 = vld [vmem:[%s1206_s3 + $0x30] ss:$8 sps:$4 sm:$0xff] (!%p192_p9)   ;;  %v866_v28 = vld [vmem:[%s1206_s3 + $0x44] ss:$8 sps:$4 sm:$0xff] (!%p192_p9)  }
  0x15   : > { %s1216_s9 = smov (!%p220_p10, %s722_s9), 7  ;;  %v849_v29 = vld [vmem:[%s1204_s1 + $0x30] sm:$0xff]   ;;  %v850_v31 = vld [vmem:[%s1204_s1 + $0x78] sm:$0xff]   ;;  %v868_v32 = vld [vmem:[%s1206_s3 + $0x40] ss:$8 sps:$4 sm:$0xff]   ;;  %s218_s23 = scalar_lea.vmem [#allocation2], %s721_s15 }
  0x16   : > { %s723_s16 = sshll.u32 %s1216_s9, 2  ;;  %v391_v30 = vsel %vm365_vm0, %v849_v29, 0  ;;  %v869_v33 = vld [vmem:[%s1206_s3 + $0x54] ss:$8 sps:$4 sm:$0xff]   ;;  %v871_v36 = vld [vmem:[%s1206_s3 + $0x50] ss:$8 sps:$4 sm:$0xff]  }
  0x17   : > { %s1050_s30 = scalar_lea.vmem %s1203_s0, %s723_s16  ;;  %v851_v34 = vld [vmem:[%s1204_s1 + $0x38] sm:$0xff]   ;;  %v872_v37 = vld [vmem:[%s1206_s3 + $0x64] ss:$8 sps:$4 sm:$0xff]   ;;  %v874_v39 = vld [vmem:[%s1206_s3 + $0x60] ss:$8 sps:$4 sm:$0xff]   ;;  %s655_s25 = sshll.u32 %s218_s23, 4  ;;  %s1155_s25 = int_to_ptr.vmem [resolvable:$true] %s655_s25 }
  0x18   : > { %770 = vmatpush3.bf16.xpose.msra.mxu0 %v376_v5  ;;  %v852_v8 = vld [vmem:[%s1050_s30] sm:$0xff]   ;;  %v394_v35 = vsel %vm365_vm0, %v851_v34, 0  ;;  %v853_v38 = vld [vmem:[%s1050_s30 + $0x8] sm:$0xff]   ;;  %v875_v40 = vld [vmem:[%s1206_s3 + $0x74] ss:$8 sps:$4 sm:$0xff]   ;;  %s1162_s9 = scalar_lea.sflag [#allocation3], %s216_s14 }
  0x19   : > { %789 = vmatprep.subr.msk.bf16.mxu0 %vm365_vm0, %v840_v6  ;;  %783 = vmatprep.mubr.msk.bf16.mxu0 %vm365_vm0, %v852_v8  ;;  %v877_v41 = vld [vmem:[%s1206_s3 + $0x70] ss:$8 sps:$4 sm:$0xff]   ;;  %v263_v45 = vld [vmem:[%s1205_s2] sm:$0x3]  ;;  %s878_s22 = scalar_lea.vmem %s1155_s25, 512  ;;  %s942_s10 = smov [#allocation2]  }
  0x1a   : > { %591 = vmatpush1.bf16.xpose.msra.mxu1 %v859_v17  ;;  %v268_v47 = vrot.slane %v263_v45, %v267_v44  ;;  %v272_v48 = vrot.slane %v263_v45, %v271_v46  ;;  %v744_v13 = vld [vmem:[%s1207_s4] ss:$0 sm:$0xff]  ;;  %p879_p11 = scmp.ne.s32.totalorder %s1155_s25, %s878_s22  ;;  %s882_s11 = sshll.u32 %s942_s10, 4  ;;  %s883_s11 = int_to_ptr.vmem [resolvable:$false] %s882_s11 }
  0x1b   : > { %592 = vmatprep.subr.bf16.mxu1 %v860_v18  ;;  %s884_s12 = scalar_lea.vmem %s883_s11, 1024  ;;  %p885_p0 = scmp.lt.s32.totalorder %s1155_s25, %s883_s11 }
  0x1c   : > { %p880_p12 = pnand %p879_p11, %p1013_p5  ;;  %p886_p1 = scmp.lt.s32.totalorder %s884_s12, %s878_s22 }
  0x1e   : > { %p881_p13 = pneg %p880_p12  ;;  %p887_p2 = por %p886_p1, %p885_p0 }
  0x20   : > { %772 = vmatpush3.bf16.xpose.msra.mxu0 %v379_v9  ;;  %p888_p3 = pnand %p887_p2, %p881_p13 }
  0x21   : > { %790 = vmatprep.subr.msk.bf16.mxu0 %vm365_vm0, %v842_v10 }
  0x22   : > { %593 = vmatpush1.bf16.xpose.msra.mxu1 %v862_v22 }
  0x23   : > { %594 = vmatprep.subr.bf16.mxu1 %v863_v23 }
  0x28   : > { %774 = vmatpush3.bf16.xpose.msra.mxu0 %v382_v15 }
  0x29   : > { %791 = vmatprep.subr.msk.bf16.mxu0 %vm365_vm0, %v844_v16 }
  0x2a   : > { %595 = vmatpush1.bf16.xpose.msra.mxu1 %v865_v27 }
  0x2b   : > { %596 = vmatprep.subr.bf16.mxu1 %v866_v28 }
  0x30   : > { %776 = vmatpush3.bf16.xpose.msra.mxu0 %v385_v20 }
  0x31   : > { %792 = vmatprep.subr.msk.bf16.mxu0 %vm365_vm0, %v846_v21 }
  0x32   : > { %597 = vmatpush1.bf16.xpose.msra.mxu1 %v868_v32 }
  0x33   : > { %598 = vmatprep.subr.bf16.mxu1 %v869_v33 }
  0x38   : > { %778 = vmatpush3.bf16.xpose.msra.mxu0 %v388_v25 }
  0x39   : > { %793 = vmatprep.subr.msk.bf16.mxu0 %vm365_vm0, %v848_v26 }
  0x3a   : > { %599 = vmatpush1.bf16.xpose.msra.mxu1 %v871_v36 }
  0x3b   : > { %600 = vmatprep.subr.bf16.mxu1 %v872_v37 }
  0x40   : > { %780 = vmatpush3.bf16.xpose.msra.mxu0 %v391_v30 }
  0x41   : > { %794 = vmatprep.subr.msk.bf16.mxu0 %vm365_vm0, %v850_v31 }
  0x42   : > { %601 = vmatpush1.bf16.xpose.msra.mxu1 %v874_v39 }
  0x43   : > { %602 = vmatprep.subr.bf16.mxu1 %v875_v40 }
  0x48   : > { %782 = vmatpush3.bf16.xpose.msra.mxu0 %v394_v35 }
  0x4a   : > { %603 = vmatpush1.bf16.xpose.msra.mxu1 %v877_v41 }
  0x4f   : > { %784 = vmatmul.mubr.msk.bf16.vlgmr.msra.gmra.mrb[0].mxu0 %vm365_vm0, %v852_v8 }
  0x50   : > { %785 = vmatprep.mubr.msk.bf16.mxu0 %vm365_vm0, %v853_v38 }
  0x57   : > { %786 = vmatmul.mubr.msk.bf16.gmra.mrb[4].mxu0 %vm365_vm0, %v853_v38 }
 0x122   : > { %v454_v49 = vpop.f32.mrb[0].mxu0 }
 0x123   : > { %v455_v50 = vadd.f32 %v454_v49, %v268_v47  ;;  %v456_v51 = vpop.f32.mrb[1].mxu0 }
 0x124   : > { %v457_v52 = vadd.f32 %v456_v51, %v272_v48  ;;  %v458_v53 = vpop.f32.mrb[2].mxu0 }
 0x125   : > { %v459_v54 = vadd.f32 %v458_v53, %v268_v47  ;;  %v460_v55 = vpop.f32.mrb[3].mxu0  ;;  %v473_v57 = vmax.f32 %v455_v50, 0.0 }
 0x126   : > { %v461_v56 = vadd.f32 %v460_v55, %v272_v48  ;;  %v474_v59 = vmax.f32 %v457_v52, 0.0 }
 0x127   : > { %v475_v58 = vmax.f32 %v459_v54, 0.0 }
 0x128   : > { %v476_v60 = vmax.f32 %v461_v56, 0.0 }
 0x129   : > { %v481_v61 = vpack.c.bf16 %v475_v58, %v473_v57 }
 0x12a   : > { %v464_v62 = vpop.f32.mrb[4].mxu0  ;;  %v482_v63 = vpack.c.bf16 %v476_v60, %v474_v59 }
 0x12b   : > { %v465_v0 = vadd.f32 %v464_v62, %v268_v47  ;;  %v466_v1 = vpop.f32.mrb[5].mxu0 }
 0x12c   : > { %v467_v2 = vadd.f32 %v466_v1, %v272_v48  ;;  %v468_v3 = vpop.f32.mrb[6].mxu0  ;;  %620 = vmatprep.mubr.bf16.mxu1 %v482_v63 }
 0x12d   : > { %v469_v4 = vadd.f32 %v468_v3, %v268_v47  ;;  %v470_v5 = vpop.f32.mrb[7].mxu0  ;;  %621 = vmatmul.mubr.bf16.vlgmr.msra.gmra.mrb[0].mxu1 %v481_v61  ;;  %v477_v7 = vmax.f32 %v465_v0, 0.0 }
 0x12e   : > { %v471_v6 = vadd.f32 %v470_v5, %v272_v48  ;;  %v478_v9 = vmax.f32 %v467_v2, 0.0 }
 0x12f   : > { %v479_v8 = vmax.f32 %v469_v4, 0.0 }
 0x130   : > { %v480_v10 = vmax.f32 %v471_v6, 0.0 }
 0x131   : > { %v483_v11 = vpack.c.bf16 %v479_v8, %v477_v7 }
 0x132   : > { %v484_v12 = vpack.c.bf16 %v480_v10, %v478_v9 }
 0x134   : > { %628 = vmatprep.mubr.bf16.mxu1 %v484_v12 }
 0x135   : > { %629 = vmatmul.mubr.bf16.gmra.mrb[4].mxu1 %v483_v11 }
 0x200   : > { %v622_v14 = vpop.f32.mrb[0].mxu1 }
 0x201   : > { %v623_v15 = vadd.f32 %v744_v13, %v622_v14  ;;  %v624_v16 = vpop.f32.mrb[1].mxu1 }
 0x202   : > { %v625_v17 = vpop.f32.mrb[2].mxu1 }
 0x203   : > { %637 = vst [vmem:[%s218_s23] sm:$0xff] %v623_v15  ;;  %v626_v18 = vadd.f32 %v744_v13, %v625_v17  ;;  %v627_v19 = vpop.f32.mrb[3].mxu1 }
 0x205   : > { %638 = vst [vmem:[%s218_s23 + $0x8] sm:$0xff] %v626_v18 }
 0x208   : > { %v630_v20 = vpop.f32.mrb[4].mxu1 }
 0x209   : > { %v631_v21 = vadd.f32 %v744_v13, %v630_v20  ;;  %v632_v22 = vpop.f32.mrb[5].mxu1 }
 0x20a   : > { %v633_v23 = vpop.f32.mrb[6].mxu1 }
 0x20b   : > { %639 = vst [vmem:[%s218_s23 + $0x10] sm:$0xff] %v631_v21  ;;  %v634_v24 = vadd.f32 %v744_v13, %v633_v23  ;;  %v635_v25 = vpop.f32.mrb[7].mxu1 }
 0x20d   : > { %640 = vst [vmem:[%s218_s23 + $0x18] sm:$0xff] %v634_v24 }
 0x20e   : > { %891 = shalt.err (!%p888_p3)
}
 0x20f   : > { %s892_s30 = scalar_lea.hbm %s1160_s8, 512  ;;  %s896_s15 = scalar_lea.hbm %s1208_s5, 1024 }
 0x210   : > { %p893_p4 = scmp.ne.s32.totalorder %s1160_s8, %s892_s30  ;;  %p897_p9 = scmp.lt.u32.totalorder %s1160_s8, %s1208_s5 }
 0x211   : > { %p898_p10 = scmp.lt.u32.totalorder %s896_s15, %s892_s30  ;;  %p900_p12 = scmp.lt.u32.totalorder %s892_s30, %s1160_s8 }
 0x212   : > { %p894_p7 = pnand %p893_p4, %p1013_p5 }
 0x213   : > { %p899_p11 = por %p898_p10, %p897_p9 }
 0x214   : > { %p895_p8 = pneg %p894_p7 }
 0x215   : > { %p901_p13 = por %p900_p12, %p899_p11 }
 0x217   : > { %p902_p0 = pnand %p901_p13, %p895_p8 }
 0x219   : > { %905 = shalt.err (!%p902_p0)
}
 0x21a   : > { %s943_s23 = smov 128   ;;  %s944_s26 = smov 8  }
 0x21b   : > { %795 = dma.vmem_to_hbm [thread:$0]  (%p1013_p5), %s1155_s25, 512, %s1160_s8, %s1162_s9, %s943_s23, %s943_s23, %s944_s26  }
 0x21c PF: > { %p801_p1 = scmp.ge.s32.totalorder %s940_s21, 2  ;;  %s670_s6 = sand.u32 1, %s928_s18  }
 0x21d   : > { %s671_s7 = scalar_lea.sflag [#allocation3], %s670_s6 }
 0x21e   : > { %p798_p2 = pnand %p801_p1, %p1017_p6 }
 0x220   : > { %923 = dma.done.wait (!%p798_p2), %s671_s7, 512  }
 0x221   : > { %925 = vsyncadd (!%p798_p2), %s671_s7, 4294966784  ;;  %p15_p3 = scmp.ge.s32.totalorder %s1000_s24, 4   ;;  %s1211_s18 = smov %s932_s19 }
 0x222   : > { %s1212_s19 = smov %s936_s20  ;;  %s1213_s20 = smov %s1011_s27 }
 0x223   : > { %s1214_s21 = smov %s1000_s24  ;;  %17 = sbr.rel (!%p15_p3) target bundleno = 3 (0x3), region = 75 }
 0x22a   :  { %676 = vsyncpa [#allocation3], 1 }
 0x22b   :  { %678 = vsyncpa [#allocation3 + $0x1], 1 }

</bundles_post_ra>
